<compile_context>
chip_gen: v7x
topology: tpu7x:2x2x1
jax: 0.10.0
libtpu: 0.0.40
codegen_flags: <defaults>
</compile_context>

<pallas_src>
import functools

import jax
import jax.numpy as jnp
from jax.experimental import pallas as pl
from jax.experimental.pallas import tpu as pltpu


def _round_up(a: int, b: int) -> int:
    return -(-a // b) * b


# ---------------------------------------------------------------------------
# Kernel 1: H[k, rows] = x[rows] @ W[k]     (x row tile resident across k)
# ---------------------------------------------------------------------------
def _xw_kernel(x_ref, w_ref, h_ref):
    h_ref[...] = jnp.dot(
        x_ref[...], w_ref[...], preferred_element_type=jnp.float32
    ).astype(h_ref.dtype)


# ---------------------------------------------------------------------------
# Kernel 2 bodies: out[i, f] += adj[k, i, j] @ H[k, j, f]
# ---------------------------------------------------------------------------
def _adj_kernel_tiled(adj_ref, h_ref, out_ref):
    k = pl.program_id(2)
    j = pl.program_id(3)

    @pl.when((k == 0) & (j == 0))
    def _():
        out_ref[...] = jnp.zeros_like(out_ref)

    out_ref[...] += jnp.dot(
        adj_ref[...], h_ref[...], preferred_element_type=jnp.float32
    )


def _adj_kernel_resident(adj_ref, h_ref, out_ref, *, tn, col_blocks):
    # h_ref holds ALL of H (2-D view (K * n_cols_p, tf)) resident in VMEM.
    k = pl.program_id(2)
    j = pl.program_id(3)

    @pl.when((k == 0) & (j == 0))
    def _():
        out_ref[...] = jnp.zeros_like(out_ref)

    start = pl.multiple_of((k * col_blocks + j) * tn, 128)
    h_tile = h_ref[pl.ds(start, tn), :]
    out_ref[...] += jnp.dot(
        adj_ref[...], h_tile, preferred_element_type=jnp.float32
    )


def cheb_conv(x, adjs, weights, *, tm=1024, tn=2048,
              resident_h_max_bytes=6 * 1024 * 1024):
    """x: (N, F_in); adjs: (K, N, N); weights: (K, F_in, F_out) -> (N, F_out)."""
    N, Fin = x.shape
    K, _, Fout = weights.shape
    assert adjs.shape == (K, N, N)

    bf16 = jnp.bfloat16
    f32 = jnp.float32

    # Lane-dense fout: minimum 128, multiple of 256 above that (v6e/v7x MXU).
    fout_p = _round_up(Fout, 128) if Fout <= 128 else _round_up(Fout, 256)
    # fout tile: full width up to 512; 256-wide 'parallel' tiles above that.
    tf = fout_p if fout_p <= 512 else 256

    # Independent row/col padding: at most one extra tile per axis (no lcm).
    tm = min(tm, _round_up(N, 8))
    tn = min(tn, _round_up(N, 128))
    n_rows_p = _round_up(N, tm)
    n_cols_p = _round_up(N, tn)

    # ---- bf16 operands; pad fused with the cast in one pass, skipped if aligned
    if n_rows_p == N and n_cols_p == N:
        adj_b = adjs.astype(bf16)
    else:
        adj_b = (jnp.zeros((K, n_rows_p, n_cols_p), bf16)
                 .at[:, :N, :N].set(adjs.astype(bf16)))
    if n_cols_p == N:
        x_b = x.astype(bf16)
    else:
        x_b = jnp.zeros((n_cols_p, Fin), bf16).at[:N].set(x.astype(bf16))
    w_b = (jnp.zeros((K, Fin, fout_p), bf16)
           .at[:, :, :Fout].set(weights.astype(bf16)))

    # ---- Kernel 1: H[k] = x @ W_k (grid (row_tiles, K), x resident over k) --
    th = tn  # divides n_cols_p by construction
    # TODO(synk): tile Fin / fout in kernel 1 if Fin * fout_p grows too big for VMEM.
    h = pl.pallas_call(
        _xw_kernel,
        out_shape=jax.ShapeDtypeStruct((K, n_cols_p, fout_p), bf16),
        grid_spec=pltpu.PrefetchScalarGridSpec(
            num_scalar_prefetch=0,
            grid=(n_cols_p // th, K),
            in_specs=[
                pl.BlockSpec((th, Fin), lambda i, k: (i, 0)),               # x (resident over k)
                pl.BlockSpec((None, Fin, fout_p), lambda i, k: (k, 0, 0)),  # W_k
            ],
            out_specs=pl.BlockSpec((None, th, fout_p), lambda i, k: (k, i, 0)),
        ),
        compiler_params=pltpu.CompilerParams(
            dimension_semantics=("parallel", "arbitrary"),
        ),
    )(x_b, w_b)

    # Contiguous 2-D view of H for kernel 2 (merge of leading dims is free).
    h2 = h.reshape(K * n_cols_p, fout_p)

    # ---- Kernel 2: out = sum_k adj_k @ H_k ----------------------------------
    col_blocks = n_cols_p // tn
    f_blocks = fout_p // tf
    grid = (n_rows_p // tm, f_blocks, K, col_blocks)

    # VMEM budget (conservatively double-buffered everywhere).
    adj_bytes = 2 * tm * tn * 2
    out_bytes = 2 * tm * tf * 4
    h_resident_bytes = K * n_cols_p * tf * 2
    use_resident_h = (f_blocks == 1 and h_resident_bytes <= resident_h_max_bytes)

    if use_resident_h:
        # Whole H resident in VMEM: fetched once, sliced per (k, j) in-kernel.
        h_spec = pl.BlockSpec((K * n_cols_p, tf), lambda i, f, k, j: (0, f))
        kernel2 = functools.partial(_adj_kernel_resident, tn=tn, col_blocks=col_blocks)
        h_bytes = 2 * h_resident_bytes
    else:
        # Streamed H tiles (re-fetched per row tile).
        h_spec = pl.BlockSpec((tn, tf), lambda i, f, k, j: (k * col_blocks + j, f))
        kernel2 = _adj_kernel_tiled
        h_bytes = 2 * tn * tf * 2

    needed = adj_bytes + out_bytes + h_bytes
    vmem_limit = int(min(48 * 1024 * 1024,
                         max(32 * 1024 * 1024, needed + 4 * 1024 * 1024)))

    cost = pl.CostEstimate(
        flops=2 * K * n_rows_p * n_cols_p * fout_p,
        transcendentals=0,
        bytes_accessed=(
            2 * K * n_rows_p * n_cols_p * f_blocks                               # adj (dominant)
            + 2 * K * n_cols_p * fout_p * (1 if use_resident_h else n_rows_p // tm)  # H
            + 4 * n_rows_p * fout_p                                              # output
        ),
    )

    out_p = pl.pallas_call(
        kernel2,
        out_shape=jax.ShapeDtypeStruct((n_rows_p, fout_p), f32),
        grid_spec=pltpu.PrefetchScalarGridSpec(
            num_scalar_prefetch=0,
            grid=grid,
            in_specs=[
                pl.BlockSpec((None, tm, tn), lambda i, f, k, j: (k, i, j)),  # adj tile stream
                h_spec,                                                      # H (resident/tiled)
            ],
            # Resident f32 accumulator across the trailing (k, j) reduction axes.
            out_specs=pl.BlockSpec((tm, tf), lambda i, f, k, j: (i, f)),
        ),
        compiler_params=pltpu.CompilerParams(
            dimension_semantics=("parallel", "parallel", "arbitrary", "arbitrary"),
            vmem_limit_bytes=vmem_limit,
        ),
        cost_estimate=cost,
    )(adj_b, h2)

    return out_p[:N, :Fout].astype(x.dtype)


# ---------------------------------------------------------------------------
# References
# ---------------------------------------------------------------------------
def cheb_conv_ref_f32(x, adjs, weights):
    out = 0.0
    for k in range(weights.shape[0]):
        out = out + adjs[k] @ (x @ weights[k])
    return out


def cheb_conv_ref_bf16(x, adjs, weights):
    # Matches the kernel's precision: bf16 operands, f32 MXU accumulation.
    bf16 = jnp.bfloat16
    xb = x.astype(bf16)
    out = 0.0
    for k in range(weights.shape[0]):
        h = jnp.dot(xb, weights[k].astype(bf16),
                    preferred_element_type=jnp.float32).astype(bf16)
        out = out + jnp.dot(adjs[k].astype(bf16), h,
                            preferred_element_type=jnp.float32)
    return out


if __name__ == "__main__":
    def make_inputs(key, N, Fin, Fout, K):
        kx, ka, kw = jax.random.split(key, 3)
        x = jax.random.normal(kx, (N, Fin), dtype=jnp.float32)
        adjs = jax.random.uniform(ka, (K, N, N), dtype=jnp.float32) / N
        limit = (6.0 / (Fin + Fout)) ** 0.5
        weights = jax.random.uniform(kw, (K, Fin, Fout), dtype=jnp.float32,
                                     minval=-limit, maxval=limit)
        return x, adjs, weights

    # Case 1: small graph (64 nodes, 32 -> 16 features, K=3), resident-H path.
    x, adjs, weights = make_inputs(jax.random.PRNGKey(0), N=64, Fin=32, Fout=16, K=3)
    out = jax.block_until_ready(cheb_conv(x, adjs, weights))
    assert out.shape == (64, 16)
    ref_b = cheb_conv_ref_bf16(x, adjs, weights)
    assert jnp.allclose(out, ref_b, atol=1e-3, rtol=1e-3), "mismatch vs bf16 reference"
    ref_f = cheb_conv_ref_f32(x, adjs, weights)
    assert jnp.allclose(out, ref_f, atol=5e-2, rtol=5e-2), "mismatch vs f32 reference"

    # Case 2: unaligned N + streamed (tiled-H) path, Fout > 128.
    x2, adjs2, weights2 = make_inputs(jax.random.PRNGKey(0), N=200, Fin=48, Fout=136, K=2)
    out2 = jax.block_until_ready(
        cheb_conv(x2, adjs2, weights2, resident_h_max_bytes=0))
    assert out2.shape == (200, 136)
    ref2 = cheb_conv_ref_bf16(x2, adjs2, weights2)
    assert jnp.allclose(out2, ref2, atol=1e-3, rtol=1e-3), "mismatch vs bf16 reference (case 2)"

    print("KERNEL_OK")
</pallas_src>

<mosaic_0001>
module attributes {stable_mosaic.version = 11 : i64} {
  func.func @_xw_kernel(%arg0: i32, %arg1: i32, %arg2: memref<128x32xbf16, #tpu.memory_space<vmem>>, %arg3: memref<1x32x128xbf16, #tpu.memory_space<vmem>>, %arg4: memref<1x128x128xbf16, #tpu.memory_space<vmem>>) attributes {dimension_semantics = [#tpu.dimension_semantics<parallel>, #tpu.dimension_semantics<arbitrary>], iteration_bounds = array<i64: 1, 3>, scalar_prefetch = 0 : i64, scratch_operands = 0 : i64, tpu.core_type = #tpu.core_type<tc>, window_params = [{transform_indices = @transform_0, window_bounds = array<i64: 128, 32>}, {transform_indices = @transform_1, window_bounds = array<i64: 1, 32, 128>}, {transform_indices = @transform_2, window_bounds = array<i64: 1, 128, 128>}]} {
    %c0 = arith.constant 0 : index
    %c0_0 = arith.constant 0 : index
    %0 = vector.load %arg2[%c0, %c0_0] : memref<128x32xbf16, #tpu.memory_space<vmem>>, vector<128x32xbf16>
    %c0_1 = arith.constant 0 : index
    %c0_2 = arith.constant 0 : index
    %c0_3 = arith.constant 0 : index
    %1 = vector.load %arg3[%c0_1, %c0_2, %c0_3] : memref<1x32x128xbf16, #tpu.memory_space<vmem>>, vector<1x32x128xbf16>
    %2 = vector.shape_cast %1 : vector<1x32x128xbf16> to vector<32x128xbf16>
    %cst = arith.constant dense<0.000000e+00> : vector<128x128xf32>
    %3 = tpu.matmul %0, %2, %cst {dimension_numbers = #tpu.dot_dimension_numbers<[1], [0], [0], [1], [0, 0, 1, 1], [], []>} : vector<128x32xbf16>, vector<32x128xbf16>, vector<128x128xf32> -> vector<128x128xf32>
    %4 = arith.truncf %3 : vector<128x128xf32> to vector<128x128xbf16>
    %c0_4 = arith.constant 0 : index
    %c0_5 = arith.constant 0 : index
    %c0_6 = arith.constant 0 : index
    %5 = vector.load %arg4[%c0_4, %c0_5, %c0_6] : memref<1x128x128xbf16, #tpu.memory_space<vmem>>, vector<1x128x128xbf16>
    %6 = vector.shape_cast %5 : vector<1x128x128xbf16> to vector<128x128xbf16>
    %7 = vector.shape_cast %4 : vector<128x128xbf16> to vector<1x128x128xbf16>
    tpu.vector_store %arg4[%c0_4, %c0_5, %c0_6], %7 {strides = array<i32>} : memref<1x128x128xbf16, #tpu.memory_space<vmem>>, vector<1x128x128xbf16>,
    return
  }
  func.func @transform_0(%arg0: i32, %arg1: i32) -> (i32, i32) {
    %c0_i32 = arith.constant 0 : i32
    %c0_i32_0 = arith.constant 0 : i32
    return %arg0, %c0_i32 : i32, i32
  }
  func.func @transform_1(%arg0: i32, %arg1: i32) -> (i32, i32, i32) {
    %c0_i32 = arith.constant 0 : i32
    %c0_i32_0 = arith.constant 0 : i32
    %c0_i32_1 = arith.constant 0 : i32
    return %arg1, %c0_i32, %c0_i32_0 : i32, i32, i32
  }
  func.func @transform_2(%arg0: i32, %arg1: i32) -> (i32, i32, i32) {
    %c0_i32 = arith.constant 0 : i32
    %c0_i32_0 = arith.constant 0 : i32
    return %arg1, %arg0, %c0_i32 : i32, i32, i32
  }
}

</mosaic_0001>

<bundles_post_ra>
// kernel: tpu_custom_call.1
= control target key start
LH: loop header
LB: loop body
LE: loop exit
PB: predicated region body
PF: predicated region fallthrough
CT: control target
= control target key end

     0   :  { %7 = vsyncpa [#allocation3], 0  ;;  %s1021_s0 = inlined_call_operand.vmem [shape: bf16[128,32], index: 0, kind: input, shape index: {}]   ;;  %s1022_s1 = inlined_call_operand.vmem [shape: bf16[3,32,128], index: 1, kind: input, shape index: {}]   ;;  %s1023_s2 = inlined_call_operand.hbm [shape: bf16[3,128,128], index: 2, kind: output, shape index: {}]  }
   0x1   :  { %9 = vsyncpa [#allocation3 + $0x1], 0  ;;  %s870_s9 = smov 0   ;;  %s872_s10 = smov 0  }
   0x2   :  { %s874_s11 = smov 0   ;;  %s876_s12 = smov 0  }
   0x3   :  { %s878_s13 = smov 0   ;;  %s880_s14 = smov 0  }
   0x4 LB: > { %s558_s15 = sadd.s32 4294967295, %s850_s14   ;;  %s559_s16 = sadd.s32 4294967294, %s850_s14   ;;  %s850_s14 = sphi %s880_s14, %s15_s14   ;;  %s846_s13 = sphi %s878_s13, %s1030_s13   ;;  %s842_s12 = sphi %s876_s12, %s1029_s12   ;;  %s838_s11 = sphi %s874_s11, %s1028_s11   ;;  %s834_s10 = sphi %s872_s10, %s1027_s10   ;;  %s830_s9 = sphi %s870_s9, %s1026_s9  }
   0x5   : > { %s24_s17 = sadd.s32 1, %s846_s13  ;;  %s88_s18 = sadd.s32 1, %s838_s11 }
   0x6   : > { %p25_p0 = scmp.ge.s32.totalorder %s24_s17, 3  ;;  %p98_p1 = scmp.ne.s32.totalorder %s838_s11, %s834_s10 }
   0x7   : > { %p99_p2 = scmp.eq.s32.totalorder %s558_s15, 2  ;;  %p104_p3 = scmp.ne.s32.totalorder %s834_s10, %s830_s9 }
   0x8   : > { %s1032_s17 = smov (%p25_p0, %s24_s17), 0  ;;  %p105_p5 = scmp.eq.s32.totalorder %s559_s16, 2 }
   0x9   : > { %p910_p4 = por %p99_p2, %p98_p1  ;;  %s83_s20 = ssub.s32 %s846_s13, %s1032_s17 }
   0xa   : > { %p563_p6 = scmp.ge.s32.totalorder %s850_s14, 1  ;;  %p86_p7 = scmp.eq.s32.totalorder %s83_s20, 0 }
   0xb   : > { %p917_p8 = por %p105_p5, %p104_p3  ;;  %p140_p9 = scmp.lt.s32.totalorder %s850_s14, 4 }
   0xc   : > { %s923_s22 = scalar_select %p86_p7, %s838_s11, %s88_s18  }
   0xd   : > { %p141_p10 = pnand %p563_p6, %p140_p9 }
   0xe   : > { %p173_p11 = scmp.lt.s32.totalorder (!%p141_p10), %s842_s12, 2  ;;  %v764_v0 = vld [vmem:[%s1021_s0] sm:$0xff] (!%p141_p10)   ;;  %vm252_vm0 = vcmask (!%p141_p10), 261120   ;;  %v766_v4 = vld [vmem:[%s1021_s0 + $0x8] sm:$0xff] (!%p141_p10)   ;;  %v768_v6 = vld [vmem:[%s1021_s0 + $0x10] sm:$0xff] (!%p141_p10)   ;;  %s164_s26 = sand.u32 (!%p141_p10), 1, %s834_s10  }
   0xf   : > { %144 = sbr.rel (%p141_p10) target bundleno = 275 (0x113), region = 28  ;;  %v765_v1 = vld [vmem:[%s1021_s0 + $0x20] sm:$0xff] (!%p141_p10)   ;;  %685 = vmatprep.mubr.msk.bf16.mxu0 (!%p141_p10), %vm252_vm0, %v764_v0  ;;  %v767_v5 = vld [vmem:[%s1021_s0 + $0x28] sm:$0xff] (!%p141_p10)   ;;  %v769_v7 = vld [vmem:[%s1021_s0 + $0x30] sm:$0xff] (!%p141_p10)   ;;  %s623_s29 = sshll.u32 (!%p141_p10), %s842_s12, 10 }
  0x10   : > { %693 = vmatprep.mubr.msk.bf16.mxu1 (!%p141_p10), %vm252_vm0, %v765_v1  ;;  %v770_v8 = vld [vmem:[%s1021_s0 + $0x18] sm:$0xff] (!%p141_p10)   ;;  %s969_s5 = scalar_lea.hbm (!%p141_p10), %s1023_s2, %s623_s29  ;;  %s852_s7 = smov (!%p141_p10), [#allocation2]  }
  0x11   : > { %v771_v9 = vld [vmem:[%s1021_s0 + $0x38] sm:$0xff] (!%p141_p10)   ;;  %s776_s8 = sshll.u32 (!%p141_p10), %s852_s7, 4  ;;  %s777_s8 = int_to_ptr.vmem [resolvable:$false] %s776_s8 }
  0x12   : > { %s778_s15 = scalar_lea.vmem (!%p141_p10), %s777_s8, 2048 }
  0x16   : > { %s174_s27 = scalar_select %p173_p11, %s842_s12, 2 }
  0x17   : > { %s975_s12 = scalar_lea.sflag [#allocation3], %s164_s26 }
  0x18   : > { %s606_s28 = sshll.u32 %s174_s27, 4  ;;  %s564_s27 = sshll.u32 %s164_s26, 6 }
  0x19   : > { %s177_s3 = scalar_lea.vmem %s1022_s1, %s606_s28  ;;  %s166_s28 = scalar_lea.vmem [#allocation2], %s564_s27 }
  0x1a   : > { %v762_v2 = vld [vmem:[%s177_s3] sm:$0xff]   ;;  %v763_v3 = vld [vmem:[%s177_s3 + $0x8] sm:$0xff]   ;;  %s470_s30 = sshll.u32 %s166_s28, 4  ;;  %s971_s30 = int_to_ptr.vmem [resolvable:$true] %s470_s30 }
  0x1b   : > { %681 = vmatprep.subr.bf16.mxu0 %v762_v2  ;;  %701 = vmatprep.subr.bf16.mxu1 %v762_v2  ;;  %s772_s6 = scalar_lea.vmem %s971_s30, 1024  ;;  %p779_p1 = scmp.lt.s32.totalorder %s971_s30, %s777_s8 }
  0x1c   : > { %682 = vmatpush3.bf16.msra.mxu0 %v762_v2  ;;  %703 = vmatpush3.bf16.msra.mxu1 %v762_v2  ;;  %p773_p12 = scmp.ne.s32.totalorder %s971_s30, %s772_s6  ;;  %p780_p2 = scmp.lt.s32.totalorder %s778_s15, %s772_s6 }
  0x1d   : > { %683 = vmatprep.subr.bf16.mxu0 %v763_v3  ;;  %702 = vmatprep.subr.bf16.mxu1 %v763_v3 }
  0x1e   : > { %p774_p13 = pnand %p773_p12, %p910_p4  ;;  %p781_p3 = por %p780_p2, %p779_p1 }
  0x20   : > { %684 = vmatpush3.bf16.msra.mxu0 %v763_v3  ;;  %704 = vmatpush3.bf16.msra.mxu1 %v763_v3  ;;  %p775_p0 = pneg %p774_p13 }
  0x22   : > { %p782_p5 = pnand %p781_p3, %p775_p0 }
  0x23   : > { %686 = vmatmul.mubr.msk.bf16.vlgmr.msra.gmra.mrb[0].mxu0 %vm252_vm0, %v766_v4  ;;  %694 = vmatmul.mubr.msk.bf16.vlgmr.msra.gmra.mrb[0].mxu1 %vm252_vm0, %v767_v5 }
  0x24   : > { %689 = vmatprep.mubr.msk.bf16.mxu0 %vm252_vm0, %v768_v6  ;;  %697 = vmatprep.mubr.msk.bf16.mxu1 %vm252_vm0, %v769_v7 }
  0x2b   : > { %690 = vmatmul.mubr.msk.bf16.gmra.mrb[4].mxu0 %vm252_vm0, %v770_v8  ;;  %698 = vmatmul.mubr.msk.bf16.gmra.mrb[4].mxu1 %vm252_vm0, %v771_v9 }
  0xf6   : > { %v687_v10 = vpop.f32.mrb[0].mxu0  ;;  %v695_v11 = vpop.f32.mrb[0].mxu1 }
  0xf7   : > { %v311_v12 = vpop.f32.mrb[1].mxu0  ;;  %v343_v13 = vpop.f32.mrb[1].mxu1 }
  0xf8   : > { %v688_v14 = vpop.f32.mrb[2].mxu0  ;;  %v696_v15 = vpop.f32.mrb[2].mxu1 }
  0xf9   : > { %v632_v16 = vpack.c.bf16 %v688_v14, %v687_v10  ;;  %v652_v17 = vpack.c.bf16 %v696_v15, %v695_v11  ;;  %v314_v18 = vpop.f32.mrb[3].mxu0  ;;  %v346_v19 = vpop.f32.mrb[3].mxu1 }
  0xfa   : > { %v627_v20 = vpack.c.bf16 %v314_v18, %v311_v12  ;;  %v647_v21 = vpack.c.bf16 %v346_v19, %v343_v13 }
  0xfb   : > { %664 = vst [vmem:[%s166_s28 + $0x8] sm:$0xff] %v632_v16   ;;  %668 = vst [vmem:[%s166_s28 + $0x28] sm:$0xff] %v652_v17  }
  0xfc   : > { %628 = vst [vmem:[%s166_s28] sm:$0xff] %v627_v20   ;;  %667 = vst [vmem:[%s166_s28 + $0x20] sm:$0xff] %v647_v21  }
  0xfe   : > { %v691_v22 = vpop.f32.mrb[4].mxu0  ;;  %v699_v23 = vpop.f32.mrb[4].mxu1 }
  0xff   : > { %v327_v24 = vpop.f32.mrb[5].mxu0  ;;  %v359_v25 = vpop.f32.mrb[5].mxu1 }
 0x100   : > { %v692_v26 = vpop.f32.mrb[6].mxu0  ;;  %v700_v27 = vpop.f32.mrb[6].mxu1 }
 0x101   : > { %v642_v28 = vpack.c.bf16 %v692_v26, %v691_v22  ;;  %v662_v29 = vpack.c.bf16 %v700_v27, %v699_v23  ;;  %v330_v30 = vpop.f32.mrb[7].mxu0  ;;  %v362_v31 = vpop.f32.mrb[7].mxu1 }
 0x102   : > { %v637_v32 = vpack.c.bf16 %v330_v30, %v327_v24  ;;  %v657_v33 = vpack.c.bf16 %v362_v31, %v359_v25 }
 0x103   : > { %666 = vst [vmem:[%s166_s28 + $0x18] sm:$0xff] %v642_v28   ;;  %670 = vst [vmem:[%s166_s28 + $0x38] sm:$0xff] %v662_v29  }
 0x104   : > { %665 = vst [vmem:[%s166_s28 + $0x10] sm:$0xff] %v637_v32   ;;  %669 = vst [vmem:[%s166_s28 + $0x30] sm:$0xff] %v657_v33  }
 0x105   : > { %785 = shalt.err (!%p782_p5)
}
 0x106   : > { %s786_s16 = scalar_lea.hbm %s969_s5, 1024  ;;  %s790_s23 = scalar_lea.hbm %s1023_s2, 3072 }
 0x107   : > { %p787_p6 = scmp.ne.s32.totalorder %s969_s5, %s786_s16  ;;  %p791_p10 = scmp.lt.u32.totalorder %s969_s5, %s1023_s2 }
 0x108   : > { %p792_p11 = scmp.lt.u32.totalorder %s790_s23, %s786_s16  ;;  %p794_p13 = scmp.lt.u32.totalorder %s786_s16, %s969_s5 }
 0x109   : > { %p788_p7 = pnand %p787_p6, %p910_p4 }
 0x10a   : > { %p793_p12 = por %p792_p11, %p791_p10 }
 0x10b   : > { %p789_p9 = pneg %p788_p7 }
 0x10c   : > { %p795_p0 = por %p794_p13, %p793_p12 }
 0x10e   : > { %p796_p1 = pnand %p795_p0, %p789_p9 }
 0x110   : > { %799 = shalt.err (!%p796_p1)
}
 0x111   : > { %s853_s26 = smov 64   ;;  %s854_s27 = smov 4  }
 0x112   : > { %705 = dma.vmem_to_hbm [thread:$0]  (%p910_p4), %s971_s30, 1024, %s969_s5, %s975_s12, %s853_s26, %s853_s26, %s854_s27  }
 0x113 PF: > { %p711_p2 = scmp.ge.s32.totalorder %s850_s14, 2  ;;  %s485_s28 = sand.u32 1, %s830_s9  }
 0x114   : > { %s486_s29 = scalar_lea.sflag [#allocation3], %s485_s28 }
 0x115   : > { %p708_p3 = pnand %p711_p2, %p917_p8 }
 0x117   : > { %825 = dma.done.wait (!%p708_p3), %s486_s29, 1024  }
 0x118   : > { %827 = vsyncadd (!%p708_p3), %s486_s29, 4294966272  ;;  %s15_s14 = sadd.s32 1, %s850_s14   ;;  %s1026_s9 = smov %s834_s10 }
 0x119   : > { %p12_p5 = scmp.ge.s32.totalorder %s15_s14, 5   ;;  %s1027_s10 = smov %s838_s11 }
 0x11a   : > { %s1028_s11 = smov %s923_s22  ;;  %s1029_s12 = smov %s846_s13 }
 0x11b   : > { %s1030_s13 = smov %s1032_s17  ;;  %14 = sbr.rel (!%p12_p5) target bundleno = 4 (0x4), region = 66 }
 0x122   :  { %491 = vsyncpa [#allocation3], 1 }
 0x123   :  { %493 = vsyncpa [#allocation3 + $0x1], 1 }

</bundles_post_ra>
